<compile_context>
chip_gen: v6e
topology: v6e:2x2x1
jax: 0.10.0
libtpu: 0.0.40
codegen_flags: <defaults>
</compile_context>

<pallas_src>
import functools

import jax
import jax.numpy as jnp
from jax.experimental import pallas as pl
from jax.experimental.pallas import tpu as pltpu


def _round_up(n, m):
    return ((n + m - 1) // m) * m


def _sq_ensemble_kernel(x_ref, w_ref, lik_ref, q_ref, inv_ev_ref, o_ref, *,
                        num_models, num_classes):
    """One grid step: a tile of rows of x.

    x_ref     : (tm, D)        input row tile (VMEM)
    w_ref     : (D, M*C)       fused per-model classifier weights (VMEM, resident)
    lik_ref   : (M,)           per-model likelihoods (SMEM)
    q_ref     : (M, M)         BQ quadrature-weight matrix (SMEM)
    inv_ev_ref: (1,)           1 / evidence (SMEM)
    o_ref     : (C, tm)        rebalanced ensemble probabilities, class-major
    """
    M, C = num_models, num_classes

    # Single fused MXU dot for all M constituent linear classifiers.
    logits = jnp.dot(x_ref[...], w_ref[...],
                     preferred_element_type=jnp.float32)          # (tm, M*C)

    # Per-model softmax heads on static lane slices; numerator integrand = p * likelihood.
    ni = []
    for m in range(M):
        lm = logits[:, m * C:(m + 1) * C]
        lm = lm - jnp.max(lm, axis=-1, keepdims=True)
        e = jnp.exp(lm)
        p = e * pl.reciprocal(jnp.sum(e, axis=-1, keepdims=True), approx=True)
        ni.append(p * lik_ref[m])                                  # (tm, C)

    # epsilon = 0.8 * min over models (sqrt-warp offset).
    mn = ni[0]
    for m in range(1, M):
        mn = jnp.minimum(mn, ni[m])
    eps = 0.8 * mn                                                 # (tm, C)

    # z_m = sqrt(2 * (ni_m - eps)); argument >= 0.2 * min(ni) >= 0 by construction.
    z = [jnp.sqrt(2.0 * (ni[m] - eps)) for m in range(M)]

    # Quadratic form sum_ij z_i Q[i,j] z_j with Q scalars read from SMEM (static unroll).
    quad = jnp.zeros_like(eps)
    for i in range(M):
        wi = z[0] * q_ref[i, 0]
        for j in range(1, M):
            wi = wi + z[j] * q_ref[i, j]
        quad = quad + z[i] * wi

    combined = (eps + 0.5 * quad) * inv_ev_ref[0]                  # (tm, C)

    # rebalance_probabilities: clip to [0, 1], renormalize each class row.
    combined = jnp.clip(combined, 0.0, 1.0)
    denom = jnp.maximum(jnp.sum(combined, axis=-1, keepdims=True), 1e-30)
    combined = combined * pl.reciprocal(denom, approx=False)

    # Lane-dense store: class-major (C, tm) layout.
    o_ref[...] = jnp.transpose(combined, (1, 0)).astype(o_ref.dtype)


def sq_ensemble_forward(x, model_weights, quad_weights, likelihoods, *,
                        tile_m=1024, compute_dtype=jnp.float32):
    """Pallas-backed SqEnsemble.forward.

    x             : (N, D) float32
    model_weights : (M, D, C) float32   -- one linear+softmax classifier per model
    quad_weights  : (M, M) float32      -- sqrt-warped BQ quadrature weights
    likelihoods   : (M,) float32
    returns       : (N, C) float32
    """
    N, D = x.shape
    M, D2, C = model_weights.shape
    assert D2 == D and quad_weights.shape == (M, M) and likelihoods.shape == (M,)

    likelihoods = likelihoods.astype(jnp.float32)
    quad_weights = quad_weights.astype(jnp.float32)

    # Evidence from the SqIntegrandModel (same formula as the module's doctest).
    eps_lik = 0.8 * jnp.min(likelihoods)
    z_lik = jnp.sqrt(2.0 * (likelihoods - eps_lik))
    evidence = eps_lik + 0.5 * (z_lik @ quad_weights @ z_lik)
    inv_evidence = (1.0 / evidence).reshape(1).astype(jnp.float32)

    # Fuse the M (D, C) classifier matrices into one (D, M*C) matrix so the
    # kernel does a single MXU dot per row tile instead of M tiny dots.
    w_fused = jnp.transpose(model_weights, (1, 0, 2)).reshape(D, M * C)
    w_fused = w_fused.astype(compute_dtype)
    x = x.astype(compute_dtype)

    # Tile selection: big row tiles amortize per-grid-step overhead; zero-pad
    # the remainder rows (padded rows are dropped on return, math stays finite).
    if N <= tile_m:
        tile = _round_up(max(N, 8), 8)
    else:
        tile = _round_up(tile_m, 128)     # keep multi-step tiles lane-aligned
    n_pad = _round_up(N, tile)
    if n_pad != N:
        x = jnp.pad(x, ((0, n_pad - N), (0, 0)))
    grid = (n_pad // tile,)

    kernel = functools.partial(_sq_ensemble_kernel, num_models=M, num_classes=C)

    out = pl.pallas_call(
        kernel,
        out_shape=jax.ShapeDtypeStruct((C, n_pad), jnp.float32),
        grid=grid,
        in_specs=[
            pl.BlockSpec((tile, D), lambda i: (i, 0)),      # x row tile
            # Resident fused weights (constant index_map).
            # TODO(synk): on v7x (64 MiB VMEM/TC) with large M*D*C, add
            # pipeline_mode=pl.Buffered(1) here to single-buffer this block.
            pl.BlockSpec((D, M * C), lambda i: (0, 0)),
            pl.BlockSpec(memory_space=pltpu.MemorySpace.SMEM),   # likelihoods
            pl.BlockSpec(memory_space=pltpu.MemorySpace.SMEM),   # quad_weights
            pl.BlockSpec(memory_space=pltpu.MemorySpace.SMEM),   # 1/evidence
        ],
        out_specs=pl.BlockSpec((C, tile), lambda i: (0, i)),
        compiler_params=pltpu.CompilerParams(
            dimension_semantics=("parallel",)),
    )(x, w_fused, likelihoods, quad_weights, inv_evidence)

    return jnp.transpose(out[:, :N])                         # (N, C)


def _reference_forward(x, model_weights, quad_weights, likelihoods):
    """Pure-JAX reference mirroring SqEnsemble.forward."""
    M = model_weights.shape[0]
    eps_lik = 0.8 * jnp.min(likelihoods)
    z_lik = jnp.sqrt(2.0 * (likelihoods - eps_lik))
    evidence = eps_lik + 0.5 * (z_lik @ quad_weights @ z_lik)

    preds = jnp.stack(
        [jax.nn.softmax(x @ model_weights[m], axis=-1) for m in range(M)],
        axis=-1,
    )                                                        # (N, C, M)
    ni = preds * likelihoods                                 # (N, C, M)
    eps = 0.8 * jnp.min(ni, axis=-1)                         # (N, C)
    z = jnp.sqrt(2.0 * (ni - eps[..., None]))                # (N, C, M)
    quad = jnp.einsum('nci,ij,ncj->nc', z, quad_weights, z)  # (N, C)
    combined = (eps + 0.5 * quad) / evidence
    combined = jnp.clip(combined, 0.0, 1.0)
    denom = jnp.maximum(jnp.sum(combined, axis=-1, keepdims=True), 1e-30)
    return combined / denom


if __name__ == "__main__":
    # Small, deterministic example shapes.
    N, D, C, M = 16, 32, 8, 4

    key = jax.random.PRNGKey(0)
    kx, kw, kq, kl = jax.random.split(key, 4)

    x = jax.random.normal(kx, (N, D), dtype=jnp.float32)
    model_weights = 0.1 * jax.random.normal(kw, (M, D, C), dtype=jnp.float32)
    # SqEnsemble quadrature weights form an (M, M) matrix; make it symmetric PD-ish.
    a = jax.random.uniform(kq, (M, M), dtype=jnp.float32, minval=0.1, maxval=1.0)
    quad_weights = 0.5 * (a + a.T) + float(M) * jnp.eye(M, dtype=jnp.float32)
    likelihoods = jax.random.uniform(kl, (M,), dtype=jnp.float32, minval=0.2, maxval=1.0)

    out = sq_ensemble_forward(x, model_weights, quad_weights, likelihoods)
    out = jax.block_until_ready(out)

    ref = _reference_forward(x, model_weights, quad_weights, likelihoods)
    assert out.shape == (N, C)
    # Tolerance accounts for the EUP approx reciprocal (~2^-12 rel err) in the
    # per-model softmax denominators plus MXU f32 accumulation differences.
    assert jnp.allclose(out, ref, atol=5e-3, rtol=5e-3), "mismatch vs. pure-JAX reference"
    assert jnp.allclose(jnp.sum(out, axis=-1), 1.0, atol=1e-4), "rows not rebalanced to 1"

    print("KERNEL_OK")
</pallas_src>

<mosaic_0001>
module attributes {stable_mosaic.version = 11 : i64} {
  func.func @_sq_ensemble_kernel(%arg0: i32, %arg1: memref<16x32xf32, #tpu.memory_space<vmem>>, %arg2: memref<32x32xf32, #tpu.memory_space<vmem>>, %arg3: memref<4xf32, #tpu.memory_space<smem>>, %arg4: memref<4x4xf32, #tpu.memory_space<smem>>, %arg5: memref<1xf32, #tpu.memory_space<smem>>, %arg6: memref<8x16xf32, #tpu.memory_space<vmem>>) attributes {dimension_semantics = [#tpu.dimension_semantics<parallel>], iteration_bounds = array<i64: 1>, scalar_prefetch = 0 : i64, scratch_operands = 0 : i64, tpu.core_type = #tpu.core_type<tc>, window_params = [{transform_indices = @transform_0, window_bounds = array<i64: 16, 32>}, {pipeline_mode = #tpu.pipeline_mode<synchronous>, transform_indices = @transform_1, window_bounds = array<i64: 32, 32>}, {transform_indices = @transform_2, window_bounds = array<i64: 4>}, {transform_indices = @transform_3, window_bounds = array<i64: 4, 4>}, {transform_indices = @transform_4, window_bounds = array<i64: 1>}, {transform_indices = @transform_5, window_bounds = array<i64: 8, 16>}]} {
    %c0 = arith.constant 0 : index
    %c0_0 = arith.constant 0 : index
    %0 = vector.load %arg1[%c0, %c0_0] : memref<16x32xf32, #tpu.memory_space<vmem>>, vector<16x32xf32>
    %c0_1 = arith.constant 0 : index
    %c0_2 = arith.constant 0 : index
    %1 = vector.load %arg2[%c0_1, %c0_2] : memref<32x32xf32, #tpu.memory_space<vmem>>, vector<32x32xf32>
    %cst = arith.constant dense<0.000000e+00> : vector<16x32xf32>
    %2 = tpu.matmul %0, %1, %cst {dimension_numbers = #tpu.dot_dimension_numbers<[1], [0], [0], [1], [0, 0, 1, 1], [], []>} : vector<16x32xf32>, vector<32x32xf32>, vector<16x32xf32> -> vector<16x32xf32>
    %3 = vector.extract_strided_slice %2 {offsets = [0, 0], sizes = [16, 8], strides = [1, 1]} : vector<16x32xf32> to vector<16x8xf32>
    %cst_3 = arith.constant dense<0xFF800000> : vector<16xf32>
    %4 = vector.multi_reduction <maximumf>, %3, %cst_3 [1] : vector<16x8xf32> to vector<16xf32>
    %5 = vector.shape_cast %4 : vector<16xf32> to vector<16x1xf32>
    %6 = vector.broadcast %5 : vector<16x1xf32> to vector<16x8xf32>
    %7 = arith.subf %3, %6 : vector<16x8xf32>
    %8 = math.exp %7 : vector<16x8xf32>
    %cst_4 = arith.constant dense<0.000000e+00> : vector<16xf32>
    %9 = vector.multi_reduction <add>, %8, %cst_4 [1] : vector<16x8xf32> to vector<16xf32>
    %10 = vector.shape_cast %9 : vector<16xf32> to vector<16x1xf32>
    %11 = tpu.reciprocal %10 {approx = true} : vector<16x1xf32> -> vector<16x1xf32>
    %12 = vector.broadcast %11 : vector<16x1xf32> to vector<16x8xf32>
    %13 = arith.mulf %8, %12 : vector<16x8xf32>
    %c0_5 = arith.constant 0 : index
    %14 = memref.load %arg3[%c0_5] : memref<4xf32, #tpu.memory_space<smem>>
    %15 = vector.broadcast %14 : f32 to vector<16x8xf32>
    %16 = arith.mulf %13, %15 : vector<16x8xf32>
    %17 = vector.extract_strided_slice %2 {offsets = [0, 8], sizes = [16, 8], strides = [1, 1]} : vector<16x32xf32> to vector<16x8xf32>
    %cst_6 = arith.constant dense<0xFF800000> : vector<16xf32>
    %18 = vector.multi_reduction <maximumf>, %17, %cst_6 [1] : vector<16x8xf32> to vector<16xf32>
    %19 = vector.shape_cast %18 : vector<16xf32> to vector<16x1xf32>
    %20 = vector.broadcast %19 : vector<16x1xf32> to vector<16x8xf32>
    %21 = arith.subf %17, %20 : vector<16x8xf32>
    %22 = math.exp %21 : vector<16x8xf32>
    %cst_7 = arith.constant dense<0.000000e+00> : vector<16xf32>
    %23 = vector.multi_reduction <add>, %22, %cst_7 [1] : vector<16x8xf32> to vector<16xf32>
    %24 = vector.shape_cast %23 : vector<16xf32> to vector<16x1xf32>
    %25 = tpu.reciprocal %24 {approx = true} : vector<16x1xf32> -> vector<16x1xf32>
    %26 = vector.broadcast %25 : vector<16x1xf32> to vector<16x8xf32>
    %27 = arith.mulf %22, %26 : vector<16x8xf32>
    %c1 = arith.constant 1 : index
    %28 = memref.load %arg3[%c1] : memref<4xf32, #tpu.memory_space<smem>>
    %29 = vector.broadcast %28 : f32 to vector<16x8xf32>
    %30 = arith.mulf %27, %29 : vector<16x8xf32>
    %31 = vector.extract_strided_slice %2 {offsets = [0, 16], sizes = [16, 8], strides = [1, 1]} : vector<16x32xf32> to vector<16x8xf32>
    %cst_8 = arith.constant dense<0xFF800000> : vector<16xf32>
    %32 = vector.multi_reduction <maximumf>, %31, %cst_8 [1] : vector<16x8xf32> to vector<16xf32>
    %33 = vector.shape_cast %32 : vector<16xf32> to vector<16x1xf32>
    %34 = vector.broadcast %33 : vector<16x1xf32> to vector<16x8xf32>
    %35 = arith.subf %31, %34 : vector<16x8xf32>
    %36 = math.exp %35 : vector<16x8xf32>
    %cst_9 = arith.constant dense<0.000000e+00> : vector<16xf32>
    %37 = vector.multi_reduction <add>, %36, %cst_9 [1] : vector<16x8xf32> to vector<16xf32>
    %38 = vector.shape_cast %37 : vector<16xf32> to vector<16x1xf32>
    %39 = tpu.reciprocal %38 {approx = true} : vector<16x1xf32> -> vector<16x1xf32>
    %40 = vector.broadcast %39 : vector<16x1xf32> to vector<16x8xf32>
    %41 = arith.mulf %36, %40 : vector<16x8xf32>
    %c2 = arith.constant 2 : index
    %42 = memref.load %arg3[%c2] : memref<4xf32, #tpu.memory_space<smem>>
    %43 = vector.broadcast %42 : f32 to vector<16x8xf32>
    %44 = arith.mulf %41, %43 : vector<16x8xf32>
    %45 = vector.extract_strided_slice %2 {offsets = [0, 24], sizes = [16, 8], strides = [1, 1]} : vector<16x32xf32> to vector<16x8xf32>
    %cst_10 = arith.constant dense<0xFF800000> : vector<16xf32>
    %46 = vector.multi_reduction <maximumf>, %45, %cst_10 [1] : vector<16x8xf32> to vector<16xf32>
    %47 = vector.shape_cast %46 : vector<16xf32> to vector<16x1xf32>
    %48 = vector.broadcast %47 : vector<16x1xf32> to vector<16x8xf32>
    %49 = arith.subf %45, %48 : vector<16x8xf32>
    %50 = math.exp %49 : vector<16x8xf32>
    %cst_11 = arith.constant dense<0.000000e+00> : vector<16xf32>
    %51 = vector.multi_reduction <add>, %50, %cst_11 [1] : vector<16x8xf32> to vector<16xf32>
    %52 = vector.shape_cast %51 : vector<16xf32> to vector<16x1xf32>
    %53 = tpu.reciprocal %52 {approx = true} : vector<16x1xf32> -> vector<16x1xf32>
    %54 = vector.broadcast %53 : vector<16x1xf32> to vector<16x8xf32>
    %55 = arith.mulf %50, %54 : vector<16x8xf32>
    %c3 = arith.constant 3 : index
    %56 = memref.load %arg3[%c3] : memref<4xf32, #tpu.memory_space<smem>>
    %57 = vector.broadcast %56 : f32 to vector<16x8xf32>
    %58 = arith.mulf %55, %57 : vector<16x8xf32>
    %59 = arith.minimumf %16, %30 : vector<16x8xf32>
    %60 = arith.minimumf %59, %44 : vector<16x8xf32>
    %61 = arith.minimumf %60, %58 : vector<16x8xf32>
    %cst_12 = arith.constant 8.000000e-01 : f32
    %62 = vector.broadcast %cst_12 : f32 to vector<16x8xf32>
    %63 = arith.mulf %62, %61 : vector<16x8xf32>
    %64 = arith.subf %16, %63 : vector<16x8xf32>
    %cst_13 = arith.constant 2.000000e+00 : f32
    %65 = vector.broadcast %cst_13 : f32 to vector<16x8xf32>
    %66 = arith.mulf %65, %64 : vector<16x8xf32>
    %67 = math.sqrt %66 : vector<16x8xf32>
    %68 = arith.subf %30, %63 : vector<16x8xf32>
    %cst_14 = arith.constant 2.000000e+00 : f32
    %69 = vector.broadcast %cst_14 : f32 to vector<16x8xf32>
    %70 = arith.mulf %69, %68 : vector<16x8xf32>
    %71 = math.sqrt %70 : vector<16x8xf32>
    %72 = arith.subf %44, %63 : vector<16x8xf32>
    %cst_15 = arith.constant 2.000000e+00 : f32
    %73 = vector.broadcast %cst_15 : f32 to vector<16x8xf32>
    %74 = arith.mulf %73, %72 : vector<16x8xf32>
    %75 = math.sqrt %74 : vector<16x8xf32>
    %76 = arith.subf %58, %63 : vector<16x8xf32>
    %cst_16 = arith.constant 2.000000e+00 : f32
    %77 = vector.broadcast %cst_16 : f32 to vector<16x8xf32>
    %78 = arith.mulf %77, %76 : vector<16x8xf32>
    %79 = math.sqrt %78 : vector<16x8xf32>
    %cst_17 = arith.constant 0.000000e+00 : f32
    %80 = vector.broadcast %cst_17 : f32 to vector<16x8xf32>
    %c0_18 = arith.constant 0 : index
    %c0_19 = arith.constant 0 : index
    %81 = memref.load %arg4[%c0_18, %c0_19] : memref<4x4xf32, #tpu.memory_space<smem>>
    %82 = vector.broadcast %81 : f32 to vector<16x8xf32>
    %83 = arith.mulf %67, %82 : vector<16x8xf32>
    %c0_20 = arith.constant 0 : index
    %c1_21 = arith.constant 1 : index
    %84 = memref.load %arg4[%c0_20, %c1_21] : memref<4x4xf32, #tpu.memory_space<smem>>
    %85 = vector.broadcast %84 : f32 to vector<16x8xf32>
    %86 = arith.mulf %71, %85 : vector<16x8xf32>
    %87 = arith.addf %83, %86 : vector<16x8xf32>
    %c0_22 = arith.constant 0 : index
    %c2_23 = arith.constant 2 : index
    %88 = memref.load %arg4[%c0_22, %c2_23] : memref<4x4xf32, #tpu.memory_space<smem>>
    %89 = vector.broadcast %88 : f32 to vector<16x8xf32>
    %90 = arith.mulf %75, %89 : vector<16x8xf32>
    %91 = arith.addf %87, %90 : vector<16x8xf32>
    %c0_24 = arith.constant 0 : index
    %c3_25 = arith.constant 3 : index
    %92 = memref.load %arg4[%c0_24, %c3_25] : memref<4x4xf32, #tpu.memory_space<smem>>
    %93 = vector.broadcast %92 : f32 to vector<16x8xf32>
    %94 = arith.mulf %79, %93 : vector<16x8xf32>
    %95 = arith.addf %91, %94 : vector<16x8xf32>
    %96 = arith.mulf %67, %95 : vector<16x8xf32>
    %97 = arith.addf %80, %96 : vector<16x8xf32>
    %c1_26 = arith.constant 1 : index
    %c0_27 = arith.constant 0 : index
    %98 = memref.load %arg4[%c1_26, %c0_27] : memref<4x4xf32, #tpu.memory_space<smem>>
    %99 = vector.broadcast %98 : f32 to vector<16x8xf32>
    %100 = arith.mulf %67, %99 : vector<16x8xf32>
    %c1_28 = arith.constant 1 : index
    %c1_29 = arith.constant 1 : index
    %101 = memref.load %arg4[%c1_28, %c1_29] : memref<4x4xf32, #tpu.memory_space<smem>>
    %102 = vector.broadcast %101 : f32 to vector<16x8xf32>
    %103 = arith.mulf %71, %102 : vector<16x8xf32>
    %104 = arith.addf %100, %103 : vector<16x8xf32>
    %c1_30 = arith.constant 1 : index
    %c2_31 = arith.constant 2 : index
    %105 = memref.load %arg4[%c1_30, %c2_31] : memref<4x4xf32, #tpu.memory_space<smem>>
    %106 = vector.broadcast %105 : f32 to vector<16x8xf32>
    %107 = arith.mulf %75, %106 : vector<16x8xf32>
    %108 = arith.addf %104, %107 : vector<16x8xf32>
    %c1_32 = arith.constant 1 : index
    %c3_33 = arith.constant 3 : index
    %109 = memref.load %arg4[%c1_32, %c3_33] : memref<4x4xf32, #tpu.memory_space<smem>>
    %110 = vector.broadcast %109 : f32 to vector<16x8xf32>
    %111 = arith.mulf %79, %110 : vector<16x8xf32>
    %112 = arith.addf %108, %111 : vector<16x8xf32>
    %113 = arith.mulf %71, %112 : vector<16x8xf32>
    %114 = arith.addf %97, %113 : vector<16x8xf32>
    %c2_34 = arith.constant 2 : index
    %c0_35 = arith.constant 0 : index
    %115 = memref.load %arg4[%c2_34, %c0_35] : memref<4x4xf32, #tpu.memory_space<smem>>
    %116 = vector.broadcast %115 : f32 to vector<16x8xf32>
    %117 = arith.mulf %67, %116 : vector<16x8xf32>
    %c2_36 = arith.constant 2 : index
    %c1_37 = arith.constant 1 : index
    %118 = memref.load %arg4[%c2_36, %c1_37] : memref<4x4xf32, #tpu.memory_space<smem>>
    %119 = vector.broadcast %118 : f32 to vector<16x8xf32>
    %120 = arith.mulf %71, %119 : vector<16x8xf32>
    %121 = arith.addf %117, %120 : vector<16x8xf32>
    %c2_38 = arith.constant 2 : index
    %c2_39 = arith.constant 2 : index
    %122 = memref.load %arg4[%c2_38, %c2_39] : memref<4x4xf32, #tpu.memory_space<smem>>
    %123 = vector.broadcast %122 : f32 to vector<16x8xf32>
    %124 = arith.mulf %75, %123 : vector<16x8xf32>
    %125 = arith.addf %121, %124 : vector<16x8xf32>
    %c2_40 = arith.constant 2 : index
    %c3_41 = arith.constant 3 : index
    %126 = memref.load %arg4[%c2_40, %c3_41] : memref<4x4xf32, #tpu.memory_space<smem>>
    %127 = vector.broadcast %126 : f32 to vector<16x8xf32>
    %128 = arith.mulf %79, %127 : vector<16x8xf32>
    %129 = arith.addf %125, %128 : vector<16x8xf32>
    %130 = arith.mulf %75, %129 : vector<16x8xf32>
    %131 = arith.addf %114, %130 : vector<16x8xf32>
    %c3_42 = arith.constant 3 : index
    %c0_43 = arith.constant 0 : index
    %132 = memref.load %arg4[%c3_42, %c0_43] : memref<4x4xf32, #tpu.memory_space<smem>>
    %133 = vector.broadcast %132 : f32 to vector<16x8xf32>
    %134 = arith.mulf %67, %133 : vector<16x8xf32>
    %c3_44 = arith.constant 3 : index
    %c1_45 = arith.constant 1 : index
    %135 = memref.load %arg4[%c3_44, %c1_45] : memref<4x4xf32, #tpu.memory_space<smem>>
    %136 = vector.broadcast %135 : f32 to vector<16x8xf32>
    %137 = arith.mulf %71, %136 : vector<16x8xf32>
    %138 = arith.addf %134, %137 : vector<16x8xf32>
    %c3_46 = arith.constant 3 : index
    %c2_47 = arith.constant 2 : index
    %139 = memref.load %arg4[%c3_46, %c2_47] : memref<4x4xf32, #tpu.memory_space<smem>>
    %140 = vector.broadcast %139 : f32 to vector<16x8xf32>
    %141 = arith.mulf %75, %140 : vector<16x8xf32>
    %142 = arith.addf %138, %141 : vector<16x8xf32>
    %c3_48 = arith.constant 3 : index
    %c3_49 = arith.constant 3 : index
    %143 = memref.load %arg4[%c3_48, %c3_49] : memref<4x4xf32, #tpu.memory_space<smem>>
    %144 = vector.broadcast %143 : f32 to vector<16x8xf32>
    %145 = arith.mulf %79, %144 : vector<16x8xf32>
    %146 = arith.addf %142, %145 : vector<16x8xf32>
    %147 = arith.mulf %79, %146 : vector<16x8xf32>
    %148 = arith.addf %131, %147 : vector<16x8xf32>
    %cst_50 = arith.constant 5.000000e-01 : f32
    %149 = vector.broadcast %cst_50 : f32 to vector<16x8xf32>
    %150 = arith.mulf %149, %148 : vector<16x8xf32>
    %151 = arith.addf %63, %150 : vector<16x8xf32>
    %c0_51 = arith.constant 0 : index
    %152 = memref.load %arg5[%c0_51] : memref<1xf32, #tpu.memory_space<smem>>
    %153 = vector.broadcast %152 : f32 to vector<16x8xf32>
    %154 = arith.mulf %151, %153 : vector<16x8xf32>
    %cst_52 = arith.constant 0.000000e+00 : f32
    %cst_53 = arith.constant 1.000000e+00 : f32
    %155 = vector.broadcast %cst_52 : f32 to vector<16x8xf32>
    %156 = arith.maximumf %155, %154 : vector<16x8xf32>
    %157 = vector.broadcast %cst_53 : f32 to vector<16x8xf32>
    %158 = arith.minimumf %157, %156 : vector<16x8xf32>
    %cst_54 = arith.constant dense<0.000000e+00> : vector<16xf32>
    %159 = vector.multi_reduction <add>, %158, %cst_54 [1] : vector<16x8xf32> to vector<16xf32>
    %160 = vector.shape_cast %159 : vector<16xf32> to vector<16x1xf32>
    %cst_55 = arith.constant 1.000000e-30 : f32
    %161 = vector.broadcast %cst_55 : f32 to vector<16x1xf32>
    %162 = arith.maximumf %160, %161 : vector<16x1xf32>
    %163 = tpu.reciprocal %162 : vector<16x1xf32> -> vector<16x1xf32>
    %164 = vector.broadcast %163 : vector<16x1xf32> to vector<16x8xf32>
    %165 = arith.mulf %158, %164 : vector<16x8xf32>
    %166 = tpu.transpose %165, [1, 0] : vector<16x8xf32> -> vector<8x16xf32>
    %c0_56 = arith.constant 0 : index
    %c0_57 = arith.constant 0 : index
    %167 = vector.load %arg6[%c0_56, %c0_57] : memref<8x16xf32, #tpu.memory_space<vmem>>, vector<8x16xf32>
    tpu.vector_store %arg6[%c0_56, %c0_57], %166 {strides = array<i32>} : memref<8x16xf32, #tpu.memory_space<vmem>>, vector<8x16xf32>,
    return
  }
  func.func @transform_0(%arg0: i32) -> (i32, i32) {
    %c0_i32 = arith.constant 0 : i32
    %c0_i32_0 = arith.constant 0 : i32
    return %arg0, %c0_i32 : i32, i32
  }
  func.func @transform_1(%arg0: i32) -> (i32, i32) {
    %c0_i32 = arith.constant 0 : i32
    %c0_i32_0 = arith.constant 0 : i32
    %c0_i32_1 = arith.constant 0 : i32
    return %c0_i32, %c0_i32_0 : i32, i32
  }
  func.func @transform_2(%arg0: i32) -> i32 {
    %c0_i32 = arith.constant 0 : i32
    %c0_i32_0 = arith.constant 0 : i32
    return %c0_i32 : i32
  }
  func.func @transform_3(%arg0: i32) -> (i32, i32) {
    %c0_i32 = arith.constant 0 : i32
    %c0_i32_0 = arith.constant 0 : i32
    %c0_i32_1 = arith.constant 0 : i32
    return %c0_i32, %c0_i32_0 : i32, i32
  }
  func.func @transform_4(%arg0: i32) -> i32 {
    %c0_i32 = arith.constant 0 : i32
    %c0_i32_0 = arith.constant 0 : i32
    return %c0_i32 : i32
  }
  func.func @transform_5(%arg0: i32) -> (i32, i32) {
    %c0_i32 = arith.constant 0 : i32
    %c0_i32_0 = arith.constant 0 : i32
    return %c0_i32, %arg0 : i32, i32
  }
}

</mosaic_0001>

<bundles_post_ra>
// kernel: tpu_custom_call.1
= control target key start
LH: loop header
LB: loop body
LE: loop exit
PB: predicated region body
PF: predicated region fallthrough
CT: control target
= control target key end

     0   :  { %11 = vsyncpa [#allocation4], 0  ;;  %s1255_s0 = inlined_call_operand.hbm [shape: f32[16,32], index: 0, kind: input, shape index: {}]   ;;  %s1256_s1 = inlined_call_operand.hbm [shape: f32[32,32], index: 1, kind: input, shape index: {}]   ;;  %s1257_s2 = inlined_call_operand.vmem [shape: f32[4], index: 2, kind: input, shape index: {}]   ;;  %s1258_s3 = inlined_call_operand.vmem [shape: f32[4,4], index: 3, kind: input, shape index: {}]   ;;  %s1259_s4 = inlined_call_operand.<no memory space> [shape: f32[1], index: 4, kind: input, shape index: {}]   ;;  %s1260_s5 = inlined_call_operand.hbm [shape: f32[8,16], index: 5, kind: output, shape index: {}]  }
   0x1   :  { %12 = vsyncpa [#allocation8], 0 }
   0x2   :  { %13 = vsyncpa [#allocation6], 0 }
   0x3   :  { %14 = vsyncpa [#allocation11], 0 }
   0x4   :  { %15 = vsyncpa [#allocation5], 0  ;;  %s939_s18 = smov [#allocation3]  }
   0x5   :  { %s21_s19 = sshll.u32 %s939_s18, 4  ;;  %s22_s19 = int_to_ptr.vmem [resolvable:$true] %s21_s19 }
   0x6   :  { %s853_s20 = scalar_lea.vmem %s22_s19, 256  ;;  %p858_p1 = scmp.lt.s32.totalorder %s22_s19, %s22_s19 }
   0x7   :  { %p854_p0 = scmp.ne.s32.totalorder %s22_s19, %s853_s20  ;;  %p859_p2 = scmp.lt.s32.totalorder %s853_s20, %s853_s20 }
   0x9   :  { %p860_p3 = por %p859_p2, %p858_p1 }
   0xb   :  { %p861_p4 = pnand %p860_p3, %p854_p0 }
   0xd   :  { %864 = shalt.err (!%p861_p4)
}
   0xe   :  { %s940_s21 = smov 128   ;;  %s941_s22 = smov 8  }
   0xf   :  { %27 = dma.hbm_to_vmem [thread:$0]  %s1255_s0, 256, %s22_s19, [#allocation4], %s940_s21, %s940_s21, %s941_s22  }
  0x10   :  { %s942_s25 = smov [#allocation7]   ;;  %s46_s29 = sshll.u32 %s1257_s2, 4  ;;  %s47_s29 = int_to_ptr.vmem [resolvable:$true] %s46_s29 }
  0x11   :  { %s33_s26 = sshll.u32 %s942_s25, 4  ;;  %s34_s26 = int_to_ptr.vmem [resolvable:$true] %s33_s26 }
  0x12   :  { %s873_s30 = scalar_lea.vmem %s34_s26, 512  ;;  %p878_p6 = scmp.lt.s32.totalorder %s34_s26, %s34_s26 }
  0x13   :  { %p874_p5 = scmp.ne.s32.totalorder %s34_s26, %s873_s30  ;;  %p879_p7 = scmp.lt.s32.totalorder %s873_s30, %s873_s30 }
  0x15   :  { %p880_p8 = por %p879_p7, %p878_p6 }
  0x17   :  { %p881_p9 = pnand %p880_p8, %p874_p5 }
  0x19   :  { %884 = shalt.err (!%p881_p9)
}
  0x1a   :  { %39 = dma.hbm_to_vmem [thread:$0]  %s1256_s1, 512, %s34_s26, [#allocation8], %s940_s21, %s940_s21, %s941_s22  }
  0x1b   :  { %s56_s9 = sshll.u32 %s1258_s3, 4  ;;  %s885_s10 = scalar_lea.vmem %s47_s29, 16  ;;  %s57_s9 = int_to_ptr.vmem [resolvable:$true] %s56_s9 }
  0x1c   :  { %p886_p10 = scmp.ne.s32.totalorder %s47_s29, %s885_s10  ;;  %p890_p11 = scmp.lt.s32.totalorder %s47_s29, %s47_s29 }
  0x1d   :  { %p891_p12 = scmp.lt.s32.totalorder %s885_s10, %s885_s10 }
  0x1f   :  { %p892_p13 = por %p891_p12, %p890_p11 }
  0x21   :  { %p893_p0 = pnand %p892_p13, %p886_p10 }
  0x23   :  { %896 = shalt.err (!%p893_p0)
}
  0x24   :  { %s943_s2 = smov [#allocation9]   ;;  %s897_s11 = scalar_lea.vmem %s57_s9, 64 }
  0x25   :  { %49 = dma.vmem_to_smem %s47_s29, 16, %s943_s2, [#allocation6]  }
  0x26   :  { %p898_p1 = scmp.ne.s32.totalorder %s57_s9, %s897_s11  ;;  %p902_p2 = scmp.lt.s32.totalorder %s57_s9, %s57_s9 }
  0x27   :  { %p903_p3 = scmp.lt.s32.totalorder %s897_s11, %s897_s11 }
  0x29   :  { %p904_p4 = por %p903_p3, %p902_p2 }
  0x2b   :  { %p905_p5 = pnand %p904_p4, %p898_p1 }
  0x2d   :  { %908 = shalt.err (!%p905_p5)
}
  0x2e   :  { %s944_s1 = smov [#allocation10]  }
  0x2f   :  { %59 = dma.vmem_to_smem %s57_s9, 64, %s944_s1, [#allocation11]  }
  0x30   :  { %929 = dma.done.wait [#allocation4], 256  }
  0x31   :  { %930 = vsyncadd [#allocation4], 4294967040 }
  0x32   :  { %931 = dma.done.wait [#allocation8], 512  }
  0x33   :  { %932 = vsyncadd [#allocation8], 4294966784 }
  0x34   :  { %933 = dma.done.wait [#allocation6], 16  }
  0x35   :  { %934 = vsyncadd [#allocation6], 4294967280 }
  0x36   :  { %935 = dma.done.wait [#allocation11], 64  }
  0x37   :  { %936 = vsyncadd [#allocation11], 4294967232 }
  0x38   :  { %74 = sfence }
  0x39   :  { %v80_v0 = vld [vmem:[#allocation7 + $0x18] sm:$0xff]  ;;  %v79_v1 = vld [vmem:[#allocation7 + $0x10] sm:$0xff]  ;;  %vm81_vm0 = vcmask 261120   ;;  %v78_v3 = vld [vmem:[#allocation7 + $0x8] sm:$0xff]  ;;  %vm225_vm1 = vcmask 195712   ;;  %vm190_vm2 = vcmask 130112  }
  0x3a   :  { %769 = vmatprep.subr.mxu0 %v80_v0  ;;  %v75_v2 = vld [vmem:[#allocation3] sm:$0xff]  ;;  %v77_v4 = vld [vmem:[#allocation7] sm:$0xff]  ;;  %v76_v5 = vld [vmem:[#allocation3 + $0x8] sm:$0xff]  ;;  %vm260_vm3 = vcmask 261312   ;;  %s945_s3 = smov 120   ;;  %s946_s12 = smov 112  }
  0x3b   :  { %770 = vmatpush3.msra.mxu0 %v80_v0  ;;  %777 = vmatprep.mubr.msk.f32.mxu0 %vm81_vm0, %v75_v2  ;;  %s947_s13 = smov 104   ;;  %vm163_vm4 = vcmask 64512   ;;  %s745_s14 = sld [smem:[#allocation9 + $0x1]] }
  0x3c   :  { %771 = vmatprep.subr.mxu0 %v79_v1  ;;  %s746_s15 = sld [smem:[#allocation9 + $0x2]]  ;;  %s948_s18 = smov 16  }
  0x3d   :  { %772 = vmatpush3.msra.mxu0 %v79_v1  ;;  %s747_s16 = sld [smem:[#allocation9 + $0x3]]  ;;  %s949_s19 = smov 24  }
  0x3e   :  { %773 = vmatprep.subr.mxu0 %v78_v3  ;;  %s186_s17 = sld [smem:[#allocation9]] }
  0x3f   :  { %774 = vmatpush3.msra.mxu0 %v78_v3  ;;  %s1089_s20 = sld [smem:[#allocation10 + $0x81]] }
  0x40   :  { %775 = vmatprep.subr.mxu0 %v77_v4  ;;  %s1094_s21 = sld [smem:[#allocation10 + $0x82]] }
  0x41   :  { %776 = vmatpush3.msra.mxu0 %v77_v4  ;;  %s1099_s23 = sld [smem:[#allocation10 + $0x101]] }
  0x42   :  { %778 = vmatmul.mubr.msk.f32.vlgmr.msra.gmra.mxu0 %vm81_vm0, %v76_v5  ;;  %v222_v5 = vstv %s745_s14  ;;  %s1102_s24 = sld [smem:[#allocation10 + $0x83]] }
  0x43   :  { %s1110_s25 = sld [smem:[#allocation10 + $0x182]] }
  0x44   :  { %s1113_s26 = sld [smem:[#allocation10 + $0x102]] }
  0x45   :  { %s1123_s27 = sld [smem:[#allocation10 + $0x181]] }
  0x46   :  { %s1134_s28 = sld [smem:[#allocation10 + $0x103]] }
  0x47   :  { %s762_s29 = sld [smem:[#allocation10 + $0x183]] }
  0x48   :  { %s1195_s30 = sld [smem:[#allocation10 + $0x80]] }
  0x49   :  { %s1201_s6 = sld [smem:[#allocation10 + $0x100]] }
  0x4a   :  { %s759_s7 = sld [smem:[#allocation10 + $0x180]] }
  0x4b   :  { %s748_s0 = sld [smem:[#allocation10 + $0x1]] }
  0x4c   :  { %s749_s8 = sld [smem:[#allocation10 + $0x2]] }
  0x4d   :  { %s750_s9 = sld [smem:[#allocation10 + $0x3]] }
 0x102   :  { %v995_v6 = vpop.f32.mrf.mxu0 }
 0x103   :  { %v229_v7 = vsel %vm225_vm1, %v995_v6, -inf  ;;  %v194_v8 = vsel %vm190_vm2, %v995_v6, -inf  ;;  %v264_v12 = vsel %vm260_vm3, %v995_v6, -inf  ;;  %v167_v39 = vsel %vm163_vm4, %v995_v6, -inf }
 0x104   :  { %230 = vmax.xlane.f32.xlu1 %v229_v7  ;;  %195 = vmax.xlane.f32.xlu0 %v194_v8  ;;  %v999_v9 = vpop.f32.mrf.mxu0 }
 0x105   :  { %v226_v10 = vsel %vm225_vm1, %v999_v9, -inf  ;;  %v191_v11 = vsel %vm190_vm2, %v999_v9, -inf  ;;  %v261_v13 = vsel %vm260_vm3, %v999_v9, -inf  ;;  %v164_v38 = vsel %vm163_vm4, %v999_v9, -inf }
 0x108   :  { %227 = vmax.xlane.f32.xlu1 %v226_v10  ;;  %192 = vmax.xlane.f32.xlu0 %v191_v11 }
 0x10c   :  { %265 = vmax.xlane.f32.xlu1 %v264_v12  ;;  %262 = vmax.xlane.f32.xlu0 %v261_v13 }
 0x18d   :  { %v231_v14 = vpop.xlane.xlu1 %230  ;;  %v196_v15 = vpop.xlane.xlu0 %195 }
 0x18e   :  { %v233_v16 = vsub.f32 %v995_v6, %v231_v14  ;;  %v198_v17 = vsub.f32 %v995_v6, %v196_v15 }
 0x190   :  { %v201_v18 = vmul.f32 1.442695, %v198_v17  ;;  %v236_v21 = vmul.f32 1.442695, %v233_v16 }
 0x191   :  { %v228_v19 = vpop.xlane.xlu1 %227  ;;  %v193_v20 = vpop.xlane.xlu0 %192 }
 0x192   :  { %v232_v22 = vsub.f32 %v999_v9, %v228_v19  ;;  %v197_v23 = vsub.f32 %v999_v9, %v193_v20  ;;  %793 = vpow2.f32 %v201_v18  ;;  %v292_v19 = vstv %s747_s16 }
 0x193   :  { %795 = vpow2.f32 %v236_v21 }
 0x194   :  { %v199_v24 = vmul.f32 1.442695, %v197_v23  ;;  %v234_v27 = vmul.f32 1.442695, %v232_v22 }
 0x195   :  { %v266_v25 = vpop.xlane.xlu1 %265  ;;  %v263_v26 = vpop.xlane.xlu0 %262 }
 0x196   :  { %v267_v28 = vsub.f32 %v999_v9, %v263_v26  ;;  %797 = vpow2.f32 %v199_v24  ;;  %v268_v29 = vsub.f32 %v995_v6, %v266_v25 }
 0x197   :  { %799 = vpow2.f32 %v234_v27 }
 0x198   :  { %v269_v30 = vmul.f32 1.442695, %v267_v28  ;;  %v271_v31 = vmul.f32 1.442695, %v268_v29 }
 0x19a   :  { %801 = vpow2.f32 %v269_v30 }
 0x19b   :  { %803 = vpow2.f32 %v271_v31 }
 0x19f   :  { %v1011_v32 = vpop.eup %793 }
 0x1a0   :  { %207 = vrot.lane.b32.xlu1 %v1011_v32, %s945_s3  ;;  %v1015_v33 = vpop.eup %795 }
 0x1a3   :  { %v1017_v34 = vpop.eup %797 }
 0x1a4   :  { %242 = vrot.lane.b32.xlu1 %v1015_v33, %s946_s12  ;;  %205 = vrot.lane.b32.xlu0 %v1017_v34, %s945_s3  ;;  %v1023_v35 = vpop.eup %799 }
 0x1a7   :  { %v1025_v36 = vpop.eup %801 }
 0x1a8   :  { %240 = vrot.lane.b32.xlu1 %v1023_v35, %s946_s12  ;;  %275 = vrot.lane.b32.xlu0 %v1025_v36, %s947_s13  ;;  %v1031_v37 = vpop.eup %803 }
 0x1ac   :  { %277 = vrot.lane.b32.xlu1 %v1031_v37, %s947_s13 }
 0x1c7   :  { %165 = vmax.xlane.f32.xlu0 %v164_v38 }
 0x1d0   :  { %168 = vmax.xlane.f32.xlu1 %v167_v39 }
 0x212   :  { %v208_v40 = vpop.permute.xlu1 %207 }
 0x213   :  { %v214_v41 = vsel %vm163_vm4, %v208_v40, 0.0 }
 0x214   :  { %215 = vadd.xlane.f32.xlu0 %v214_v41 }
 0x216   :  { %v243_v42 = vpop.permute.xlu1 %242  ;;  %v206_v43 = vpop.permute.xlu0 %205 }
 0x217   :  { %v249_v44 = vsel %vm163_vm4, %v243_v42, 0.0  ;;  %v211_v45 = vsel %vm163_vm4, %v206_v43, 0.0 }
 0x218   :  { %250 = vadd.xlane.f32.xlu1 %v249_v44  ;;  %212 = vadd.xlane.f32.xlu0 %v211_v45 }
 0x21a   :  { %v241_v46 = vpop.permute.xlu1 %240  ;;  %v276_v48 = vpop.permute.xlu0 %275 }
 0x21b   :  { %v246_v47 = vsel %vm163_vm4, %v241_v46, 0.0  ;;  %v281_v51 = vsel %vm163_vm4, %v276_v48, 0.0 }
 0x21c   :  { %247 = vadd.xlane.f32.xlu0 %v246_v47 }
 0x21e   :  { %v278_v49 = vpop.permute.xlu1 %277 }
 0x21f   :  { %v284_v50 = vsel %vm163_vm4, %v278_v49, 0.0 }
 0x220   :  { %285 = vadd.xlane.f32.xlu1 %v284_v50  ;;  %282 = vadd.xlane.f32.xlu0 %v281_v51 }
 0x250   :  { %v166_v52 = vpop.xlane.xlu0 %165 }
 0x251   :  { %v170_v53 = vsub.f32 %v999_v9, %v166_v52  ;;  %v257_v9 = vstv %s746_s15 }
 0x253   :  { %v172_v54 = vmul.f32 1.442695, %v170_v53 }
 0x255   :  { %805 = vpow2.f32 %v172_v54 }
 0x259   :  { %v169_v55 = vpop.xlane.xlu1 %168 }
 0x25a   :  { %v171_v56 = vsub.f32 %v995_v6, %v169_v55 }
 0x25c   :  { %v174_v57 = vmul.f32 1.442695, %v171_v56 }
 0x25e   :  { %807 = vpow2.f32 %v174_v57 }
 0x262   :  { %v806_v58 = vpop.eup %805 }
 0x263   :  { %v176_v59 = vsel %vm163_vm4, %v806_v58, 0.0 }
 0x264   :  { %177 = vadd.xlane.f32.xlu0 %v176_v59 }
 0x26b   :  { %v808_v60 = vpop.eup %807 }
 0x26c   :  { %v179_v61 = vsel %vm163_vm4, %v808_v60, 0.0 }
 0x26d   :  { %180 = vadd.xlane.f32.xlu1 %v179_v61 }
 0x29d   :  { %v216_v62 = vpop.xlane.xlu0 %215 }
 0x29e   :  { %809 = vrcp.f32 %v216_v62 }
 0x2a1   :  { %v251_v63 = vpop.xlane.xlu1 %250  ;;  %v213_v0 = vpop.xlane.xlu0 %212 }
 0x2a2   :  { %811 = vrcp.f32 %v251_v63 }
 0x2a3   :  { %813 = vrcp.f32 %v213_v0 }
 0x2a5   :  { %v248_v1 = vpop.xlane.xlu0 %247 }
 0x2a6   :  { %815 = vrcp.f32 %v248_v1 }
 0x2a9   :  { %v286_v2 = vpop.xlane.xlu1 %285  ;;  %v283_v3 = vpop.xlane.xlu0 %282 }
 0x2aa   :  { %817 = vrcp.f32 %v286_v2 }
 0x2ab   :  { %v810_v4 = vpop.eup %809  ;;  %819 = vrcp.f32 %v283_v3 }
 0x2ac   :  { %v220_v6 = vmul.f32 %v810_v4, %v1011_v32 }
 0x2ae   :  { %v224_v7 = vmul.f32 %v222_v5, %v220_v6 }
 0x2af   :  { %v812_v8 = vpop.eup %811 }
 0x2b0   :  { %v814_v10 = vpop.eup %813  ;;  %299 = vrot.lane.b32.xlu1 %v224_v7, %s945_s3  ;;  %v255_v11 = vmul.f32 %v812_v8, %v1015_v33  ;;  %v187_v33 = vstv %s186_s17 }
 0x2b1   :  { %v219_v12 = vmul.f32 %v814_v10, %v1017_v34 }
 0x2b2   :  { %v259_v13 = vmul.f32 %v257_v9, %v255_v11 }
 0x2b3   :  { %v816_v14 = vpop.eup %815  ;;  %v223_v15 = vmul.f32 %v222_v5, %v219_v12  ;;  %v474_v5 = vstv %s1089_s20  ;;  %v488_v12 = vstv %s1094_s21 }
 0x2b4   :  { %309 = vrot.lane.b32.xlu1 %v259_v13, %s946_s12  ;;  %v254_v16 = vmul.f32 %v816_v14, %v1023_v35 }
 0x2b5   :  { %297 = vrot.lane.b32.xlu0 %v223_v15, %s945_s3 }
 0x2b6   :  { %v1056_v17 = vmul.f32 %v257_v9, %v254_v16 }
 0x2b7   :  { %v818_v18 = vpop.eup %817 }
 0x2b8   :  { %v820_v20 = vpop.eup %819  ;;  %307 = vrot.lane.b32.xlu1 %v1056_v17, %s946_s12  ;;  %v290_v21 = vmul.f32 %v818_v18, %v1031_v37 }
 0x2b9   :  { %v289_v22 = vmul.f32 %v820_v20, %v1025_v36  ;;  %v502_v20 = vstv %s1102_s24 }
 0x2ba   :  { %v294_v23 = vmul.f32 %v292_v19, %v290_v21  ;;  %v540_v21 = vstv %s1099_s23 }
 0x2bb   :  { %v293_v24 = vmul.f32 %v292_v19, %v289_v22 }
 0x2bc   :  { %319 = vrot.lane.b32.xlu1 %v294_v23, %s947_s13 }
 0x2bd   :  { %317 = vrot.lane.b32.xlu0 %v293_v24, %s947_s13 }
 0x2ed   :  { %v178_v26 = vpop.xlane.xlu0 %177 }
 0x2f6   :  { %v181_v25 = vpop.xlane.xlu1 %180 }
 0x2f7   :  { %821 = vrcp.f32 %v181_v25 }
 0x2f8   :  { %823 = vrcp.f32 %v178_v26 }
 0x304   :  { %v822_v27 = vpop.eup %821 }
 0x305   :  { %v824_v29 = vpop.eup %823  ;;  %v185_v30 = vmul.f32 %v822_v27, %v808_v60 }
 0x306   :  { %v184_v32 = vmul.f32 %v824_v29, %v806_v58  ;;  %v554_v29 = vstv %s1113_s26 }
 0x307   :  { %v1064_v34 = vmul.f32 %v187_v33, %v185_v30 }
 0x308   :  { %v1066_v36 = vmul.f32 %v187_v33, %v184_v32 }
 0x322   :  { %v300_v28 = vpop.permute.xlu1 %299 }
 0x323   :  { %v304_v38 = vmin.f32 %v1064_v34, %v300_v28  ;;  %v620_v28 = vstv %s1110_s25 }
 0x326   :  { %v310_v31 = vpop.permute.xlu1 %309 }
 0x327   :  { %v298_v35 = vpop.permute.xlu0 %297  ;;  %v314_v40 = vmin.f32 %v304_v38, %v310_v31  ;;  %v606_v38 = vstv %s1123_s27 }
 0x328   :  { %v303_v39 = vmin.f32 %v1066_v36, %v298_v35 }
 0x32a   :  { %v308_v37 = vpop.permute.xlu1 %307 }
 0x32b   :  { %v313_v41 = vmin.f32 %v303_v39, %v308_v37 }
 0x32e   :  { %v320_v42 = vpop.permute.xlu1 %319 }
 0x32f   :  { %v324_v43 = vmin.f32 %v314_v40, %v320_v42  ;;  %v318_v44 = vpop.permute.xlu0 %317 }
 0x330   :  { %v323_v45 = vmin.f32 %v313_v41, %v318_v44 }
 0x331   :  { %v1070_v46 = vmul.f32 0.8, %v324_v43 }
 0x332   :  { %v1072_v47 = vmul.f32 0.8, %v323_v45  ;;  %v568_v45 = vstv %s1134_s28 }
 0x333   :  { %349 = vrot.lane.b32.xlu1 %v1070_v46, %s941_s22 }
 0x334   :  { %347 = vrot.lane.b32.xlu0 %v1072_v47, %s941_s22 }
 0x337   :  { %373 = vrot.lane.b32.xlu1 %v1070_v46, %s948_s18 }
 0x338   :  { %371 = vrot.lane.b32.xlu0 %v1072_v47, %s948_s18 }
 0x33b   :  { %397 = vrot.lane.b32.xlu1 %v1070_v46, %s949_s19 }
 0x33c   :  { %395 = vrot.lane.b32.xlu0 %v1072_v47, %s949_s19 }
 0x3a5   :  { %v350_v48 = vpop.permute.xlu1 %349 }
 0x3a6   :  { %v354_v49 = vsub.f32 %v224_v7, %v350_v48  ;;  %v348_v50 = vpop.permute.xlu0 %347 }
 0x3a7   :  { %v353_v52 = vsub.f32 %v223_v15, %v348_v50 }
 0x3a8   :  { %v356_v51 = vmul.f32 2.0, %v354_v49 }
 0x3a9   :  { %v374_v53 = vpop.permute.xlu1 %373  ;;  %v1086_v57 = vmul.f32 2.0, %v353_v52 }
 0x3aa   :  { %825 = vrsqrt.f32 %v356_v51  ;;  %v378_v54 = vsub.f32 %v259_v13, %v374_v53  ;;  %v372_v55 = vpop.permute.xlu0 %371  ;;  %vm366_vm5 = vcmp.eq.f32.partialorder %v356_v51, inf  ;;  %v369_v4 = vand.u32 2147483648, %v356_v51 }
 0x3ab   :  { %v377_v63 = vsub.f32 %v1056_v17, %v372_v55  ;;  %vm368_vm6 = vcmp.eq.f32.partialorder %v356_v51, 0.0  ;;  %vm359_vm11 = vcmp.eq.f32.partialorder %v1086_v57, inf  ;;  %v362_v33 = vand.u32 2147483648, %v1086_v57 }
 0x3ac   :  { %v380_v56 = vmul.f32 2.0, %v378_v54  ;;  %vm361_vm12 = vcmp.eq.f32.partialorder %v1086_v57, 0.0 }
 0x3ad   :  { %v398_v58 = vpop.permute.xlu1 %397  ;;  %v1096_v1 = vmul.f32 2.0, %v377_v63  ;;  %v328_v63 = vsub.f32 %v1064_v34, %v1070_v46 }
 0x3ae   :  { %827 = vrsqrt.f32 %v380_v56  ;;  %v402_v59 = vsub.f32 %v294_v23, %v398_v58  ;;  %v396_v60 = vpop.permute.xlu0 %395  ;;  %vm390_vm7 = vcmp.eq.f32.partialorder %v380_v56, inf  ;;  %v393_v11 = vand.u32 2147483648, %v380_v56 }
 0x3af   :  { %v401_v61 = vsub.f32 %v293_v24, %v396_v60  ;;  %829 = vrsqrt.f32 %v1086_v57  ;;  %vm392_vm8 = vcmp.eq.f32.partialorder %v380_v56, 0.0  ;;  %vm383_vm15 = vcmp.eq.f32.partialorder %v1096_v1, inf }
 0x3b0   :  { %v404_v62 = vmul.f32 2.0, %v402_v59  ;;  %v386_v50 = vand.u32 2147483648, %v1096_v1  ;;  %vm385_vm0 = vcmp.eq.f32.partialorder %v1096_v1, 0.0  ;;  %v634_v60 = vstv %s762_s29 }
 0x3b1   :  { %v1092_v0 = vmul.f32 2.0, %v401_v61 }
 0x3b2   :  { %831 = vrsqrt.f32 %v404_v62  ;;  %vm414_vm9 = vcmp.eq.f32.partialorder %v404_v62, inf  ;;  %v417_v19 = vand.u32 2147483648, %v404_v62  ;;  %vm416_vm10 = vcmp.eq.f32.partialorder %v404_v62, 0.0 }
 0x3b3   :  { %833 = vrsqrt.f32 %v1092_v0  ;;  %vm407_vm13 = vcmp.eq.f32.partialorder %v1092_v0, inf  ;;  %v410_v42 = vand.u32 2147483648, %v1092_v0  ;;  %vm409_vm14 = vcmp.eq.f32.partialorder %v1092_v0, 0.0 }
 0x3b4   :  { %835 = vrsqrt.f32 %v1096_v1 }
 0x3b7   :  { %v826_v2 = vpop.eup %825 }
 0x3b8   :  { %v365_v3 = vmul.f32 %v826_v2, %v356_v51  ;;  %v327_v2 = vsub.f32 %v1066_v36, %v1072_v47 }
 0x3ba   :  { %v367_v6 = vsel %vm366_vm5, %v356_v51, %v365_v3 }
 0x3bb   :  { %v828_v7 = vpop.eup %827  ;;  %v1105_v8 = vsel %vm368_vm6, %v369_v4, %v367_v6  ;;  %v329_v4 = vmul.f32 2.0, %v327_v2  ;;  %vm723_vm6 = vcmask 130048  }
 0x3bc   :  { %v476_v9 = vmul.f32 %v474_v5, %v1105_v8  ;;  %v389_v10 = vmul.f32 %v828_v7, %v380_v56  ;;  %v830_v13 = vpop.eup %829  ;;  %v542_v27 = vmul.f32 %v540_v21, %v1105_v8  ;;  %v608_v43 = vmul.f32 %v606_v38, %v1105_v8 }
 0x3bd   :  { %v358_v23 = vmul.f32 %v830_v13, %v1086_v57  ;;  %v470_v7 = vstv %s1195_s30  ;;  %vm333_vm3 = vcmp.eq.f32.partialorder %v329_v4, inf  ;;  %vm335_vm5 = vcmp.eq.f32.partialorder %v329_v4, 0.0 }
 0x3be   :  { %481 = vrot.lane.b32.xlu1 %v476_v9, %s945_s3  ;;  %v391_v14 = vsel %vm390_vm7, %v380_v56, %v389_v10 }
 0x3bf   :  { %v832_v15 = vpop.eup %831  ;;  %v1116_v16 = vsel %vm392_vm8, %v393_v11, %v391_v14  ;;  %v360_v30 = vsel %vm359_vm11, %v1086_v57, %v358_v23 }
 0x3c0   :  { %v490_v17 = vmul.f32 %v488_v12, %v1116_v16  ;;  %v413_v18 = vmul.f32 %v832_v15, %v404_v62  ;;  %v834_v24 = vpop.eup %833  ;;  %v622_v35 = vmul.f32 %v620_v28, %v1116_v16  ;;  %v556_v37 = vmul.f32 %v554_v29, %v1116_v16 }
 0x3c1   :  { %v406_v31 = vmul.f32 %v834_v24, %v1092_v0  ;;  %v836_v32 = vpop.eup %835  ;;  %v1145_v39 = vsel %vm361_vm12, %v362_v33, %v360_v30 }
 0x3c2   :  { %495 = vrot.lane.b32.xlu0 %v490_v17, %s946_s12  ;;  %v415_v22 = vsel %vm414_vm9, %v404_v62, %v413_v18  ;;  %v382_v41 = vmul.f32 %v836_v32, %v1096_v1  ;;  %v541_v44 = vmul.f32 %v540_v21, %v1145_v39  ;;  %v475_v54 = vmul.f32 %v474_v5, %v1145_v39 }
 0x3c3   :  { %v1127_v25 = vsel %vm416_vm10, %v417_v19, %v415_v22  ;;  %v408_v40 = vsel %vm407_vm13, %v1092_v0, %v406_v31  ;;  %v607_v58 = vmul.f32 %v606_v38, %v1145_v39  ;;  %v330_v0 = vmul.f32 2.0, %v328_v63 }
 0x3c4   :  { %v504_v26 = vmul.f32 %v502_v20, %v1127_v25  ;;  %v1157_v48 = vsel %vm409_vm14, %v410_v42, %v408_v40  ;;  %v384_v49 = vsel %vm383_vm15, %v1096_v1, %v382_v41  ;;  %v570_v51 = vmul.f32 %v568_v45, %v1127_v25 }
 0x3c5   :  { %v503_v52 = vmul.f32 %v502_v20, %v1157_v48  ;;  %v1167_v53 = vsel %vm385_vm0, %v386_v50, %v384_v49  ;;  %v569_v57 = vmul.f32 %v568_v45, %v1157_v48  ;;  %v635_v61 = vmul.f32 %v634_v60, %v1157_v48 }
 0x3c6   :  { %509 = vrot.lane.b32.xlu1 %v504_v26, %s947_s13  ;;  %547 = vrot.lane.b32.xlu0 %v542_v27, %s945_s3  ;;  %v555_v55 = vmul.f32 %v554_v29, %v1167_v53  ;;  %v489_v56 = vmul.f32 %v488_v12, %v1167_v53  ;;  %v621_v59 = vmul.f32 %v620_v28, %v1167_v53  ;;  %837 = vrsqrt.f32 %v330_v0 }
 0x3c7   :  { %v636_v62 = vmul.f32 %v634_v60, %v1127_v25  ;;  %vm340_vm1 = vcmp.eq.f32.partialorder %v330_v0, inf  ;;  %v343_v6 = vand.u32 2147483648, %v330_v0  ;;  %vm342_vm2 = vcmp.eq.f32.partialorder %v330_v0, 0.0 }
 0x3c8   :  { %839 = vrsqrt.f32 %v329_v4  ;;  %v536_v18 = vstv %s1201_s6  ;;  %v336_v29 = vand.u32 2147483648, %v329_v4  ;;  %v602_v40 = vstv %s759_s7 }
 0x3ca   :  { %627 = vrot.lane.b32.xlu1 %v622_v35, %s946_s12  ;;  %561 = vrot.lane.b32.xlu0 %v556_v37, %s946_s12 }
 0x3ce   :  { %613 = vrot.lane.b32.xlu0 %v608_v43, %s945_s3  ;;  %545 = vrot.lane.b32.xlu1 %v541_v44, %s945_s3 }
 0x3d2   :  { %575 = vrot.lane.b32.xlu0 %v570_v51, %s947_s13  ;;  %507 = vrot.lane.b32.xlu1 %v503_v52, %s947_s13 }
 0x3d3   :  { %v838_v1 = vpop.eup %837 }
 0x3d4   :  { %v339_v3 = vmul.f32 %v838_v1, %v330_v0  ;;  %v424_v1 = vstv %s748_s0 }
 0x3d5   :  { %v840_v17 = vpop.eup %839 }
 0x3d6   :  { %479 = vrot.lane.b32.xlu0 %v475_v54, %s945_s3  ;;  %559 = vrot.lane.b32.xlu1 %v555_v55, %s946_s12  ;;  %v341_v5 = vsel %vm340_vm1, %v330_v0, %v339_v3  ;;  %v332_v22 = vmul.f32 %v840_v17, %v329_v4  ;;  %v426_v3 = vmul.f32 %v424_v1, %v1105_v8 }
 0x3d7   :  { %v1198_v9 = vsel %vm342_vm2, %v343_v6, %v341_v5  ;;  %v425_v5 = vmul.f32 %v424_v1, %v1145_v39 }
 0x3d8   :  { %v472_v10 = vmul.f32 %v470_v7, %v1198_v9  ;;  %v538_v21 = vmul.f32 %v536_v18, %v1198_v9  ;;  %v334_v28 = vsel %vm333_vm3, %v329_v4, %v332_v22  ;;  %v604_v45 = vmul.f32 %v602_v40, %v1198_v9 }
 0x3d9   :  { %v1206_v33 = vsel %vm335_vm5, %v336_v29, %v334_v28  ;;  %v438_v4 = vstv %s749_s8 }
 0x3da   :  { %493 = vrot.lane.b32.xlu0 %v489_v56, %s946_s12  ;;  %573 = vrot.lane.b32.xlu1 %v569_v57, %s947_s13  ;;  %v471_v38 = vmul.f32 %v470_v7, %v1206_v33  ;;  %v537_v44 = vmul.f32 %v536_v18, %v1206_v33  ;;  %v603_v52 = vmul.f32 %v602_v40, %v1206_v33  ;;  %v452_v7 = vstv %s750_s9 }
 0x3db   :  { %v440_v6 = vmul.f32 %v438_v4, %v1116_v16 }
 0x3de   :  { %611 = vrot.lane.b32.xlu0 %v607_v58, %s945_s3  ;;  %625 = vrot.lane.b32.xlu1 %v621_v59, %s946_s12 }
 0x3e2   :  { %639 = vrot.lane.b32.xlu0 %v635_v61, %s947_s13  ;;  %641 = vrot.lane.b32.xlu1 %v636_v62, %s947_s13 }
 0x430   :  { %v482_v34 = vpop.permute.xlu1 %481 }
 0x431   :  { %v486_v36 = vadd.f32 %v482_v34, %v472_v10  ;;  %v439_v34 = vmul.f32 %v438_v4, %v1167_v53  ;;  %v454_v10 = vmul.f32 %v452_v7, %v1127_v25 }
 0x434   :  { %v496_v11 = vpop.permute.xlu0 %495 }
 0x435   :  { %v500_v12 = vadd.f32 %v496_v11, %v486_v36  ;;  %v453_v11 = vmul.f32 %v452_v7, %v1157_v48 }
 0x438   :  { %v510_v13 = vpop.permute.xlu1 %509  ;;  %v548_v14 = vpop.permute.xlu0 %547 }
 0x439   :  { %v514_v15 = vadd.f32 %v510_v13, %v500_v12  ;;  %v552_v26 = vadd.f32 %v548_v14, %v538_v21 }
 0x43b   :  { %519 = vrot.lane.b32.xlu1 %v514_v15, %s941_s22 }
 0x43c   :  { %v628_v19 = vpop.permute.xlu1 %627  ;;  %v562_v20 = vpop.permute.xlu0 %561 }
 0x43d   :  { %v566_v27 = vadd.f32 %v562_v20, %v552_v26 }
 0x440   :  { %v546_v23 = vpop.permute.xlu1 %545  ;;  %v614_v24 = vpop.permute.xlu0 %613 }
 0x441   :  { %v551_v50 = vadd.f32 %v546_v23, %v537_v44  ;;  %v618_v51 = vadd.f32 %v614_v24, %v604_v45 }
 0x443   :  { %v632_v60 = vadd.f32 %v628_v19, %v618_v51 }
 0x444   :  { %v508_v30 = vpop.permute.xlu1 %507  ;;  %v576_v31 = vpop.permute.xlu0 %575 }
 0x445   :  { %v580_v32 = vadd.f32 %v576_v31, %v566_v27 }
 0x447   :  { %585 = vrot.lane.b32.xlu1 %v580_v32, %s948_s18 }
 0x448   :  { %v560_v35 = vpop.permute.xlu1 %559  ;;  %v480_v37 = vpop.permute.xlu0 %479 }
 0x449   :  { %v485_v41 = vadd.f32 %v480_v37, %v471_v38  ;;  %v565_v57 = vadd.f32 %v560_v35, %v551_v50 }
 0x44c   :  { %v574_v42 = vpop.permute.xlu1 %573  ;;  %v494_v43 = vpop.permute.xlu0 %493 }
 0x44d   :  { %v499_v49 = vadd.f32 %v494_v43, %v485_v41  ;;  %v579_v59 = vadd.f32 %v574_v42, %v565_v57  ;;  %v672_v57 = vstv %s1259_s4  ;;  %s950_s4 = smov [#allocation12]  }
 0x44e   :  { %s731_s11 = sshll.u32 %s950_s4, 4  ;;  %s732_s11 = int_to_ptr.vmem [resolvable:$true] %s731_s11 }
 0x44f   :  { %v513_v54 = vadd.f32 %v508_v30, %v499_v49  ;;  %s909_s1 = scalar_lea.vmem %s732_s11, 128  ;;  %p914_p7 = scmp.lt.s32.totalorder %s732_s11, %s732_s11 }
 0x450   :  { %v626_v55 = vpop.permute.xlu1 %625  ;;  %v612_v56 = vpop.permute.xlu0 %611  ;;  %p910_p6 = scmp.ne.s32.totalorder %s732_s11, %s909_s1  ;;  %p915_p8 = scmp.lt.s32.totalorder %s909_s1, %s909_s1 }
 0x451   :  { %v617_v58 = vadd.f32 %v612_v56, %v603_v52  ;;  %517 = vrot.lane.b32.xlu0 %v513_v54, %s941_s22  ;;  %s419_s22 = sld [smem:[#allocation10]] }
 0x452   :  { %p916_p9 = por %p915_p8, %p914_p7 }
 0x453   :  { %v631_v61 = vadd.f32 %v626_v55, %v617_v58 }
 0x454   :  { %v642_v62 = vpop.permute.xlu1 %641  ;;  %v640_v63 = vpop.permute.xlu0 %639  ;;  %p917_p10 = pnand %p916_p9, %p910_p6 }
 0x455   :  { %v646_v0 = vadd.f32 %v642_v62, %v632_v60  ;;  %583 = vrot.lane.b32.xlu0 %v579_v59, %s948_s18  ;;  %v645_v2 = vadd.f32 %v640_v63, %v631_v61 }
 0x457   :  { %651 = vrot.lane.b32.xlu1 %v646_v0, %s949_s19  ;;  %v420_v23 = vstv %s419_s22 }
 0x459   :  { %649 = vrot.lane.b32.xlu0 %v645_v2, %s949_s19 }
 0x45b   :  { %431 = vrot.lane.b32.xlu1 %v426_v3, %s945_s3 }
 0x45d   :  { %429 = vrot.lane.b32.xlu0 %v425_v5, %s945_s3 }
 0x45f   :  { %445 = vrot.lane.b32.xlu1 %v440_v6, %s946_s12 }
 0x461   :  { %443 = vrot.lane.b32.xlu0 %v439_v34, %s946_s12 }
 0x463   :  { %459 = vrot.lane.b32.xlu1 %v454_v10, %s947_s13 }
 0x465   :  { %457 = vrot.lane.b32.xlu0 %v453_v11, %s947_s13 }
 0x4ad   :  { %v520_v36 = vpop.permute.xlu1 %519 }
 0x4ae   :  { %v524_v12 = vmul.f32 %v520_v36, %v1105_v8 }
 0x4b0   :  { %529 = vrot.lane.b32.xlu1 %v524_v12, %s945_s3 }
 0x4b9   :  { %v586_v13 = vpop.permute.xlu1 %585 }
 0x4ba   :  { %v590_v14 = vmul.f32 %v586_v13, %v1116_v16 }
 0x4bc   :  { %595 = vrot.lane.b32.xlu1 %v590_v14, %s946_s12 }
 0x4c3   :  { %v518_v15 = vpop.permute.xlu0 %517 }
 0x4c4   :  { %v523_v17 = vmul.f32 %v518_v15, %v1145_v39 }
 0x4c6   :  { %527 = vrot.lane.b32.xlu0 %v523_v17, %s945_s3 }
 0x4c7   :  { %v584_v18 = vpop.permute.xlu0 %583 }
 0x4c8   :  { %v589_v19 = vmul.f32 %v584_v18, %v1167_v53  ;;  %v422_v53 = vmul.f32 %v420_v23, %v1198_v9 }
 0x4c9   :  { %v652_v20 = vpop.permute.xlu1 %651 }
 0x4ca   :  { %v656_v21 = vmul.f32 %v652_v20, %v1127_v25  ;;  %593 = vrot.lane.b32.xlu0 %v589_v19, %s946_s12  ;;  %v421_v25 = vmul.f32 %v420_v23, %v1206_v33 }
 0x4cb   :  { %v650_v8 = vpop.permute.xlu0 %649 }
 0x4cc   :  { %v655_v22 = vmul.f32 %v650_v8, %v1157_v48  ;;  %661 = vrot.lane.b32.xlu1 %v656_v21, %s947_s13 }
 0x4cd   :  { %v432_v16 = vpop.permute.xlu1 %431 }
 0x4ce   :  { %659 = vrot.lane.b32.xlu0 %v655_v22, %s947_s13  ;;  %v436_v27 = vadd.f32 %v432_v16, %v422_v53 }
 0x4cf   :  { %v430_v39 = vpop.permute.xlu0 %429 }
 0x4d0   :  { %v435_v29 = vadd.f32 %v430_v39, %v421_v25 }
 0x4d1   :  { %v446_v24 = vpop.permute.xlu1 %445 }
 0x4d2   :  { %v450_v30 = vadd.f32 %v446_v24, %v436_v27 }
 0x4d3   :  { %v444_v26 = vpop.permute.xlu0 %443 }
 0x4d4   :  { %v449_v48 = vadd.f32 %v444_v26, %v435_v29 }
 0x4d5   :  { %v460_v28 = vpop.permute.xlu1 %459 }
 0x4d6   :  { %v464_v32 = vadd.f32 %v460_v28, %v450_v30 }
 0x4d7   :  { %v458_v31 = vpop.permute.xlu0 %457 }
 0x4d8   :  { %v463_v37 = vadd.f32 %v458_v31, %v449_v48  ;;  %v466_v40 = vmul.f32 %v464_v32, %v1198_v9 }
 0x4da   :  { %v465_v43 = vmul.f32 %v463_v37, %v1206_v33 }
 0x522   :  { %v530_v35 = vpop.permute.xlu1 %529 }
 0x523   :  { %v534_v42 = vadd.f32 %v530_v35, %v466_v40 }
 0x52e   :  { %v596_v41 = vpop.permute.xlu1 %595 }
 0x52f   :  { %v600_v45 = vadd.f32 %v596_v41, %v534_v42 }
 0x538   :  { %v528_v38 = vpop.permute.xlu0 %527 }
 0x539   :  { %v533_v49 = vadd.f32 %v528_v38, %v465_v43 }
 0x53c   :  { %v594_v44 = vpop.permute.xlu0 %593 }
 0x53d   :  { %v599_v51 = vadd.f32 %v594_v44, %v533_v49 }
 0x53e   :  { %v662_v50 = vpop.permute.xlu1 %661 }
 0x53f   :  { %v666_v52 = vadd.f32 %v662_v50, %v600_v45 }
 0x540   :  { %v660_v54 = vpop.permute.xlu0 %659 }
 0x541   :  { %v668_v55 = vmul.f32 0.5, %v666_v52  ;;  %v665_v56 = vadd.f32 %v660_v54, %v599_v51 }
 0x543   :  { %v670_v58 = vadd.f32 %v668_v55, %v1070_v46  ;;  %v667_v9 = vmul.f32 0.5, %v665_v56 }
 0x545   :  { %v669_v59 = vadd.f32 %v667_v9, %v1072_v47  ;;  %v674_v60 = vmul.f32 %v672_v57, %v670_v58 }
 0x547   :  { %v676_v33 = vmax.f32 %v674_v60, 0.0  ;;  %v673_v61 = vmul.f32 %v672_v57, %v669_v59 }
 0x549   :  { %v678_v62 = vmin.f32 %v676_v33, 1.0  ;;  %v675_v63 = vmax.f32 %v673_v61, 0.0 }
 0x54b   :  { %v682_v0 = vsel %vm163_vm4, %v678_v62, 0.0  ;;  %v677_v1 = vmin.f32 %v675_v63, 1.0 }
 0x54c   :  { %683 = vadd.xlane.f32.xlu1 %v682_v0 }
 0x54d   :  { %v679_v2 = vsel %vm163_vm4, %v677_v1, 0.0 }
 0x54e   :  { %680 = vadd.xlane.f32.xlu0 %v679_v2 }
 0x5d5   :  { %v684_v3 = vpop.xlane.xlu1 %683 }
 0x5d6   :  { %v686_v5 = vmax.f32 %v684_v3, 1e-30 }
 0x5d7   :  { %v681_v4 = vpop.xlane.xlu0 %680 }
 0x5d8   :  { %v685_v6 = vmax.f32 %v681_v4, 1e-30 }
 0x5da   :  { %841 = vrcp.f32 %v685_v6 }
 0x5db   :  { %843 = vrcp.f32 %v686_v5 }
 0x5e7   :  { %v842_v46 = vpop.eup %841 }
 0x5e8   :  { %v689_v47 = vmul.f32 %v842_v46, %v677_v1  ;;  %v844_v7 = vpop.eup %843 }
 0x5e9   :  { %v690_v34 = vmul.f32 %v844_v7, %v678_v62 }
 0x5ea   :  { %691 = vxpose.xlu0.b32.start [1/2] (short) (narrow) %v689_v47, 8 }
 0x5ee   :  { %692 = vxpose.xlu0.b32.end [2/2] (short) (narrow) %v690_v34, 8 }
 0x666   :  { %v707_v10 = vpop.trf.xlu0 }
 0x667   :  { %724 = vst.msk [vmem:[#allocation12] sm:$0xff] %vm723_vm6, %v707_v10 }
 0x668   :  { %920 = shalt.err (!%p917_p10)
}
 0x669   :  { %734 = dma.vmem_to_hbm [thread:$0]  %s732_s11, 128, %s1260_s5, [#allocation5]  }
 0x66a   :  { %937 = dma.done.wait [#allocation5], 128  }
 0x66b   :  { %938 = vsyncadd [#allocation5], 4294967168 }
 0x66c   :  { %738 = vsyncpa [#allocation4], 1 }
 0x66d   :  { %739 = vsyncpa [#allocation8], 1 }
 0x66e   :  { %740 = vsyncpa [#allocation5], 1 }
 0x66f   :  { %741 = vsyncpa [#allocation6], 1 }
 0x670   :  { %742 = vsyncpa [#allocation11], 1 }

</bundles_post_ra>
